<compile_context>
chip_gen: v7x
topology: tpu7x:2x2x1
jax: 0.10.0
libtpu: 0.0.40
codegen_flags: <defaults>
</compile_context>

<pallas_src>
import functools

import jax
import jax.numpy as jnp
from jax import lax
from jax.experimental import pallas as pl
from jax.experimental.pallas import tpu as pltpu

_EPS = 1e-6        # final-denominator eps (matches the PyTorch module)
_LEN_EPS = 1e-30   # tiny clamp: keeps rsqrt finite on zero/garbage rows


def _cos_loss_kernel(vp_ref, v_ref, msk_ref, out_ref, num_acc, den_acc,
                     *, n_rows, row_tile):
    i = pl.program_id(0)

    @pl.when(i == 0)
    def _():
        num_acc[...] = jnp.zeros_like(num_acc)
        den_acc[...] = jnp.zeros_like(den_acc)

    vp = vp_ref[...].astype(jnp.float32)   # (tile, F)
    v = v_ref[...].astype(jnp.float32)     # (tile, F)
    m = msk_ref[...].astype(jnp.float32)   # (tile, 1)

    # Per-row reductions over the feature (lane) axis.
    dot = jnp.sum(vp * v, axis=-1, keepdims=True)        # (tile, 1)
    sq_vp = jnp.sum(vp * vp, axis=-1, keepdims=True)     # (tile, 1)
    sq_v = jnp.sum(v * v, axis=-1, keepdims=True)        # (tile, 1)

    # cos = dot / (|vp| * |v|) via a single rsqrt (EUP slot, ~free while
    # the kernel is DMA-bound). Clamp avoids NaN/Inf from degenerate rows.
    cos = dot * lax.rsqrt(jnp.maximum(sq_vp * sq_v, _LEN_EPS))

    # Mask rows beyond the real row count (the ragged last tile's tail holds
    # stale VMEM, so select with `where` instead of multiplying by 0).
    row_ids = i * row_tile + lax.broadcasted_iota(jnp.int32, (row_tile, 1), 0)
    valid = row_ids < n_rows

    num_acc[...] += jnp.where(valid, (1.0 - cos) * m, 0.0)
    den_acc[...] += jnp.where(valid, m, 0.0)

    # Scalar reduce + divide only once, on the final grid step.
    @pl.when(i == pl.num_programs(0) - 1)
    def _():
        num = jnp.sum(num_acc[...])
        den = jnp.sum(den_acc[...])
        out_ref[...] = (num / (den + _EPS)).reshape(1, 1)


@functools.partial(jax.jit, static_argnames=("row_tile",))
def vector_similarity_loss(v_pred, v, msk, *, row_tile=2048):
    """Pallas equivalent of VectorSimilarityLoss.forward.

    v_pred, v : (B, T, F) float
    msk       : (B, T)    float
    returns   : scalar float32
    """
    B, T, F = v_pred.shape
    N = B * T

    vp2 = v_pred.reshape(N, F)
    v2 = v.reshape(N, F)
    m2 = msk.reshape(N, 1)

    # Cap the row tile so (2 vector inputs) x (2 pipeline buffers) stays well
    # inside the scoped-VMEM default on every generation (v5e 16 MiB ... v7x).
    budget_bytes = 8 * 1024 * 1024
    cap = max(8, (budget_bytes // (2 * 2 * F * 4)) // 8 * 8)
    tile = min(row_tile, cap)
    tile = min(tile, max(8, ((N + 7) // 8) * 8))   # don't exceed (rounded) N
    tile = max(8, (tile // 8) * 8)                 # keep sublane-aligned

    grid = pl.cdiv(N, tile)
    kernel = functools.partial(_cos_loss_kernel, n_rows=N, row_tile=tile)

    out = pl.pallas_call(
        kernel,
        out_shape=jax.ShapeDtypeStruct((1, 1), jnp.float32),
        grid_spec=pltpu.PrefetchScalarGridSpec(
            num_scalar_prefetch=0,
            grid=(grid,),
            in_specs=[
                pl.BlockSpec((tile, F), lambda i: (i, 0)),
                pl.BlockSpec((tile, F), lambda i: (i, 0)),
                pl.BlockSpec((tile, 1), lambda i: (i, 0)),
            ],
            out_specs=pl.BlockSpec((1, 1), lambda i: (0, 0)),
            scratch_shapes=[
                pltpu.VMEM((tile, 1), jnp.float32),
                pltpu.VMEM((tile, 1), jnp.float32),
            ],
        ),
        compiler_params=pltpu.CompilerParams(
            dimension_semantics=("arbitrary",)),
    )(vp2, v2, m2)
    return out[0, 0]


def _reference(v_pred, v, msk):
    dot = jnp.sum(v_pred * v, axis=-1)
    lp = jnp.sqrt(jnp.sum(v_pred ** 2, axis=-1))
    lv = jnp.sqrt(jnp.sum(v ** 2, axis=-1))
    cos = dot / lp / lv
    return jnp.sum((1.0 - cos) * msk) / (jnp.sum(msk) + _EPS)


if __name__ == "__main__":
    key = jax.random.PRNGKey(0)

    def make(B, T, F, key):
        k1, k2, k3 = jax.random.split(key, 3)
        v_pred = jax.random.normal(k1, (B, T, F), dtype=jnp.float32)
        v = jax.random.normal(k2, (B, T, F), dtype=jnp.float32)
        msk = (jax.random.uniform(k3, (B, T)) > 0.3).astype(jnp.float32)
        return v_pred, v, msk

    # 1) small, tile-aligned case (B=2, T=8, F=32 -> N=16)
    k0, k1, k2 = jax.random.split(key, 3)
    vp, v, m = make(2, 8, 32, k0)
    loss = vector_similarity_loss(vp, v, m)
    jax.block_until_ready(loss)
    ref = _reference(vp, v, m)
    assert jnp.allclose(loss, ref, atol=1e-4, rtol=1e-4), (loss, ref)

    # 2) ragged row count (N=15) -> exercises in-kernel tail masking
    vp, v, m = make(3, 5, 32, k1)
    loss = vector_similarity_loss(vp, v, m)
    jax.block_until_ready(loss)
    ref = _reference(vp, v, m)
    assert jnp.allclose(loss, ref, atol=1e-4, rtol=1e-4), (loss, ref)

    # 3) multi-tile accumulation path (N=80 with row_tile=16 -> 5 grid steps)
    vp, v, m = make(2, 40, 32, k2)
    loss = vector_similarity_loss(vp, v, m, row_tile=16)
    jax.block_until_ready(loss)
    ref = _reference(vp, v, m)
    assert jnp.allclose(loss, ref, atol=1e-4, rtol=1e-4), (loss, ref)

    print("KERNEL_OK")
</pallas_src>

<mosaic_0001>
module attributes {stable_mosaic.version = 11 : i64} {
  func.func @_cos_loss_kernel(%arg0: i32, %arg1: memref<16x32xf32, #tpu.memory_space<vmem>>, %arg2: memref<16x32xf32, #tpu.memory_space<vmem>>, %arg3: memref<16x1xf32, #tpu.memory_space<vmem>>, %arg4: memref<1x1xf32, #tpu.memory_space<vmem>>, %arg5: memref<16x1xf32, #tpu.memory_space<vmem>>, %arg6: memref<16x1xf32, #tpu.memory_space<vmem>>) attributes {dimension_semantics = [#tpu.dimension_semantics<arbitrary>], iteration_bounds = array<i64: 1>, scalar_prefetch = 0 : i64, scratch_operands = 2 : i64, tpu.core_type = #tpu.core_type<tc>, window_params = [{transform_indices = @transform_0, window_bounds = array<i64: 16, 32>}, {transform_indices = @transform_1, window_bounds = array<i64: 16, 32>}, {transform_indices = @transform_2, window_bounds = array<i64: 16, 1>}, {pipeline_mode = #tpu.pipeline_mode<synchronous>, transform_indices = @transform_3, window_bounds = array<i64: 1, 1>}]} {
    %c0_i32 = arith.constant 0 : i32
    %0 = arith.cmpi eq, %arg0, %c0_i32 : i32
    %1 = arith.extui %0 : i1 to i32
    %c0_i32_0 = arith.constant 0 : i32
    %2 = arith.cmpi ne, %1, %c0_i32_0 : i32
    scf.if %2 {
      %cst_23 = arith.constant 0.000000e+00 : f32
      %42 = vector.broadcast %cst_23 : f32 to vector<16x1xf32>
      %c0_24 = arith.constant 0 : index
      %c0_25 = arith.constant 0 : index
      %43 = vector.load %arg5[%c0_24, %c0_25] : memref<16x1xf32, #tpu.memory_space<vmem>>, vector<16x1xf32>
      tpu.vector_store %arg5[%c0_24, %c0_25], %42 {strides = array<i32>} : memref<16x1xf32, #tpu.memory_space<vmem>>, vector<16x1xf32>,
      %cst_26 = arith.constant 0.000000e+00 : f32
      %44 = vector.broadcast %cst_26 : f32 to vector<16x1xf32>
      %c0_27 = arith.constant 0 : index
      %c0_28 = arith.constant 0 : index
      %45 = vector.load %arg6[%c0_27, %c0_28] : memref<16x1xf32, #tpu.memory_space<vmem>>, vector<16x1xf32>
      tpu.vector_store %arg6[%c0_27, %c0_28], %44 {strides = array<i32>} : memref<16x1xf32, #tpu.memory_space<vmem>>, vector<16x1xf32>,
    } else {
    }
    %c0 = arith.constant 0 : index
    %c0_1 = arith.constant 0 : index
    %3 = vector.load %arg1[%c0, %c0_1] : memref<16x32xf32, #tpu.memory_space<vmem>>, vector<16x32xf32>
    %c0_2 = arith.constant 0 : index
    %c0_3 = arith.constant 0 : index
    %4 = vector.load %arg2[%c0_2, %c0_3] : memref<16x32xf32, #tpu.memory_space<vmem>>, vector<16x32xf32>
    %c0_4 = arith.constant 0 : index
    %c0_5 = arith.constant 0 : index
    %5 = vector.load %arg3[%c0_4, %c0_5] : memref<16x1xf32, #tpu.memory_space<vmem>>, vector<16x1xf32>
    %6 = arith.mulf %3, %4 : vector<16x32xf32>
    %cst = arith.constant dense<0.000000e+00> : vector<16xf32>
    %7 = vector.multi_reduction <add>, %6, %cst [1] : vector<16x32xf32> to vector<16xf32>
    %8 = vector.shape_cast %7 : vector<16xf32> to vector<16x1xf32>
    %9 = arith.mulf %3, %3 : vector<16x32xf32>
    %cst_6 = arith.constant dense<0.000000e+00> : vector<16xf32>
    %10 = vector.multi_reduction <add>, %9, %cst_6 [1] : vector<16x32xf32> to vector<16xf32>
    %11 = vector.shape_cast %10 : vector<16xf32> to vector<16x1xf32>
    %12 = arith.mulf %4, %4 : vector<16x32xf32>
    %cst_7 = arith.constant dense<0.000000e+00> : vector<16xf32>
    %13 = vector.multi_reduction <add>, %12, %cst_7 [1] : vector<16x32xf32> to vector<16xf32>
    %14 = vector.shape_cast %13 : vector<16xf32> to vector<16x1xf32>
    %15 = arith.mulf %11, %14 : vector<16x1xf32>
    %cst_8 = arith.constant 1.000000e-30 : f32
    %16 = vector.broadcast %cst_8 : f32 to vector<16x1xf32>
    %17 = arith.maximumf %15, %16 : vector<16x1xf32>
    %18 = math.rsqrt %17 : vector<16x1xf32>
    %19 = arith.mulf %8, %18 : vector<16x1xf32>
    %c16_i32 = arith.constant 16 : i32
    %20 = arith.muli %arg0, %c16_i32 : i32
    %21 = tpu.iota {dimensions = array<i32: 0>} : vector<16x1xi32>
    %22 = vector.broadcast %20 : i32 to vector<16x1xi32>
    %23 = arith.addi %22, %21 : vector<16x1xi32>
    %c16_i32_9 = arith.constant 16 : i32
    %24 = vector.broadcast %c16_i32_9 : i32 to vector<16x1xi32>
    %25 = arith.cmpi slt, %23, %24 : vector<16x1xi32>
    %c0_10 = arith.constant 0 : index
    %c0_11 = arith.constant 0 : index
    %26 = vector.load %arg5[%c0_10, %c0_11] : memref<16x1xf32, #tpu.memory_space<vmem>>, vector<16x1xf32>
    %cst_12 = arith.constant 1.000000e+00 : f32
    %27 = vector.broadcast %cst_12 : f32 to vector<16x1xf32>
    %28 = arith.subf %27, %19 : vector<16x1xf32>
    %29 = arith.mulf %28, %5 : vector<16x1xf32>
    %cst_13 = arith.constant 0.000000e+00 : f32
    %30 = vector.broadcast %cst_13 : f32 to vector<16x1xf32>
    %31 = arith.select %25, %29, %30 : vector<16x1xi1>, vector<16x1xf32>
    %32 = arith.addf %26, %31 : vector<16x1xf32>
    %c0_14 = arith.constant 0 : index
    %c0_15 = arith.constant 0 : index
    %33 = vector.load %arg5[%c0_14, %c0_15] : memref<16x1xf32, #tpu.memory_space<vmem>>, vector<16x1xf32>
    tpu.vector_store %arg5[%c0_14, %c0_15], %32 {strides = array<i32>} : memref<16x1xf32, #tpu.memory_space<vmem>>, vector<16x1xf32>,
    %c0_16 = arith.constant 0 : index
    %c0_17 = arith.constant 0 : index
    %34 = vector.load %arg6[%c0_16, %c0_17] : memref<16x1xf32, #tpu.memory_space<vmem>>, vector<16x1xf32>
    %cst_18 = arith.constant 0.000000e+00 : f32
    %35 = vector.broadcast %cst_18 : f32 to vector<16x1xf32>
    %36 = arith.select %25, %5, %35 : vector<16x1xi1>, vector<16x1xf32>
    %37 = arith.addf %34, %36 : vector<16x1xf32>
    %c0_19 = arith.constant 0 : index
    %c0_20 = arith.constant 0 : index
    %38 = vector.load %arg6[%c0_19, %c0_20] : memref<16x1xf32, #tpu.memory_space<vmem>>, vector<16x1xf32>
    tpu.vector_store %arg6[%c0_19, %c0_20], %37 {strides = array<i32>} : memref<16x1xf32, #tpu.memory_space<vmem>>, vector<16x1xf32>,
    %c0_i32_21 = arith.constant 0 : i32
    %39 = arith.cmpi eq, %arg0, %c0_i32_21 : i32
    %40 = arith.extui %39 : i1 to i32
    %c0_i32_22 = arith.constant 0 : i32
    %41 = arith.cmpi ne, %40, %c0_i32_22 : i32
    scf.if %41 {
      %c0_23 = arith.constant 0 : index
      %c0_24 = arith.constant 0 : index
      %42 = vector.load %arg5[%c0_23, %c0_24] : memref<16x1xf32, #tpu.memory_space<vmem>>, vector<16x1xf32>
      %43 = vector.shape_cast %42 : vector<16x1xf32> to vector<1x16x1xf32>
      %cst_25 = arith.constant dense<0.000000e+00> : vector<1xf32>
      %44 = vector.multi_reduction <add>, %43, %cst_25 [1, 2] : vector<1x16x1xf32> to vector<1xf32>
      %45 = vector.shape_cast %44 : vector<1xf32> to vector<1x1x1xf32>
      %46 = vector.extract %45[0, 0, 0] : f32 from vector<1x1x1xf32>
      %c0_26 = arith.constant 0 : index
      %c0_27 = arith.constant 0 : index
      %47 = vector.load %arg6[%c0_26, %c0_27] : memref<16x1xf32, #tpu.memory_space<vmem>>, vector<16x1xf32>
      %48 = vector.shape_cast %47 : vector<16x1xf32> to vector<1x16x1xf32>
      %cst_28 = arith.constant dense<0.000000e+00> : vector<1xf32>
      %49 = vector.multi_reduction <add>, %48, %cst_28 [1, 2] : vector<1x16x1xf32> to vector<1xf32>
      %50 = vector.shape_cast %49 : vector<1xf32> to vector<1x1x1xf32>
      %51 = vector.extract %50[0, 0, 0] : f32 from vector<1x1x1xf32>
      %cst_29 = arith.constant 9.99999997E-7 : f32
      %52 = arith.addf %51, %cst_29 : f32
      %53 = arith.divf %46, %52 : f32
      %54 = vector.broadcast %53 : f32 to vector<1x1xf32>
      %c0_30 = arith.constant 0 : index
      %c0_31 = arith.constant 0 : index
      %55 = vector.load %arg4[%c0_30, %c0_31] : memref<1x1xf32, #tpu.memory_space<vmem>>, vector<1x1xf32>
      tpu.vector_store %arg4[%c0_30, %c0_31], %54 {strides = array<i32>} : memref<1x1xf32, #tpu.memory_space<vmem>>, vector<1x1xf32>,
    } else {
    }
    return
  }
  func.func @transform_0(%arg0: i32) -> (i32, i32) {
    %c0_i32 = arith.constant 0 : i32
    %c0_i32_0 = arith.constant 0 : i32
    return %arg0, %c0_i32 : i32, i32
  }
  func.func @transform_1(%arg0: i32) -> (i32, i32) {
    %c0_i32 = arith.constant 0 : i32
    %c0_i32_0 = arith.constant 0 : i32
    return %arg0, %c0_i32 : i32, i32
  }
  func.func @transform_2(%arg0: i32) -> (i32, i32) {
    %c0_i32 = arith.constant 0 : i32
    %c0_i32_0 = arith.constant 0 : i32
    return %arg0, %c0_i32 : i32, i32
  }
  func.func @transform_3(%arg0: i32) -> (i32, i32) {
    %c0_i32 = arith.constant 0 : i32
    %c0_i32_0 = arith.constant 0 : i32
    %c0_i32_1 = arith.constant 0 : i32
    return %c0_i32, %c0_i32_0 : i32, i32
  }
}

</mosaic_0001>

<bundles_post_ra>
// kernel: vector_similarity_loss.1
= control target key start
LH: loop header
LB: loop body
LE: loop exit
PB: predicated region body
PF: predicated region fallthrough
CT: control target
= control target key end

     0   :  { %8 = vsyncpa [#allocation5], 0  ;;  %s305_s0 = inlined_call_operand.vmem [shape: f32[16,32], index: 0, kind: input, shape index: {}]   ;;  %s306_s1 = inlined_call_operand.hbm [shape: f32[16,32], index: 1, kind: input, shape index: {}]   ;;  %s307_s2 = inlined_call_operand.vmem [shape: f32[16,1], index: 2, kind: input, shape index: {}]   ;;  %s308_s3 = inlined_call_operand.hbm [shape: f32[1,1], index: 3, kind: output, shape index: {}]  }
   0x1   :  { %9 = vsyncpa [#allocation6], 0  ;;  %s226_s12 = smov [#allocation4]   ;;  %s178_s16 = scalar_lea.hbm %s306_s1, 256 }
   0x2   :  { %s17_s13 = sshll.u32 %s226_s12, 4  ;;  %p179_p0 = scmp.ne.s32.totalorder %s306_s1, %s178_s16  ;;  %s18_s13 = int_to_ptr.vmem [resolvable:$true] %s17_s13 }
   0x3   :  { %p182_p1 = scmp.lt.u32.totalorder %s178_s16, %s306_s1 }
   0x5   :  { %p184_p2 = pnand %p182_p1, %p179_p0 }
   0x7   :  { %187 = shalt.err (!%p184_p2)
}
   0x8   :  { %s188_s21 = scalar_lea.vmem %s18_s13, 256  ;;  %p193_p4 = scmp.lt.s32.totalorder %s18_s13, %s18_s13 }
   0x9   :  { %p189_p3 = scmp.ne.s32.totalorder %s18_s13, %s188_s21  ;;  %p194_p5 = scmp.lt.s32.totalorder %s188_s21, %s188_s21 }
   0xb   :  { %p195_p6 = por %p194_p5, %p193_p4 }
   0xd   :  { %p196_p7 = pnand %p195_p6, %p189_p3 }
   0xf   :  { %199 = shalt.err (!%p196_p7)
}
  0x10   :  { %s227_s22 = smov 128   ;;  %s228_s23 = smov 8  }
  0x11   :  { %23 = dma.hbm_to_vmem [thread:$0]  %s306_s1, 256, %s18_s13, [#allocation5], %s227_s22, %s227_s22, %s228_s23  }
  0x12   :  { %222 = dma.done.wait [#allocation5], 256  }
  0x13   :  { %223 = vsyncadd [#allocation5], 4294967040  ;;  %v40_v0 = vld [vmem:[#allocation4] sm:$0xff]  ;;  %vm46_vm0 = vcmask 261120   ;;  %v41_v2 = vld [vmem:[#allocation4 + $0x8] sm:$0xff]  ;;  %vm33_vm1 = vcmask 7168  }
  0x14   :  { %v38_v1 = vld [vmem:[%s305_s0] sm:$0xff]  ;;  %v61_v3 = vmul.f32 %v40_v0, %v40_v0  ;;  %v62_v5 = vmul.f32 %v41_v2, %v41_v2  ;;  %v39_v6 = vld [vmem:[%s305_s0 + $0x8] sm:$0xff]  ;;  %v229_v16 = vmov 0.0   ;;  %s230_s7 = smov [#allocation7]   ;;  %vm144_vm2 = vcmask 0  }
  0x15   :  { %v53_v4 = vmul.f32 %v38_v1, %v38_v1  ;;  %v54_v7 = vmul.f32 %v39_v6, %v39_v6  ;;  %v44_v12 = vmul.f32 %v40_v0, %v38_v1  ;;  %v45_v13 = vmul.f32 %v41_v2, %v39_v6  ;;  %34 = vst.msk [vmem:[#allocation2] sm:$0xff] %vm33_vm1, %v229_v16  ;;  %v42_v17 = vld [vmem:[%s307_s2] sm:$0xff]  ;;  %v43_v19 = vld [vmem:[%s307_s2 + $0x8] sm:$0xff]  ;;  %s152_s8 = sshll.u32 %s230_s7, 4  ;;  %s153_s8 = int_to_ptr.vmem [resolvable:$true] %s152_s8 }
  0x16   :  { %v63_v8 = vsel %vm46_vm0, %v61_v3, 0.0  ;;  %v66_v10 = vsel %vm46_vm0, %v62_v5, 0.0  ;;  %36 = vst.msk [vmem:[#allocation3] sm:$0xff] %vm33_vm1, %v229_v16  ;;  %35 = vst.msk [vmem:[#allocation2 + $0x8] sm:$0xff] %vm33_vm1, %v229_v16  ;;  %s200_s11 = scalar_lea.vmem %s153_s8, 16  ;;  %s204_s12 = scalar_lea.vmem %s153_s8, 32 }
  0x17   :  { %v55_v9 = vsel %vm46_vm0, %v53_v4, 0.0  ;;  %64 = vadd.xlane.f32.xlu1 %v63_v8  ;;  %v58_v11 = vsel %vm46_vm0, %v54_v7, 0.0  ;;  %v47_v14 = vsel %vm46_vm0, %v44_v12, 0.0  ;;  %v50_v15 = vsel %vm46_vm0, %v45_v13, 0.0  ;;  %37 = vst.msk [vmem:[#allocation3 + $0x8] sm:$0xff] %vm33_vm1, %v229_v16  ;;  %p201_p8 = scmp.ne.s32.totalorder %s153_s8, %s200_s11  ;;  %p205_p9 = scmp.lt.s32.totalorder %s153_s8, %s153_s8 }
  0x18   :  { %56 = vadd.xlane.f32.xlu0 %v55_v9  ;;  %p206_p10 = scmp.lt.s32.totalorder %s204_s12, %s200_s11 }
  0x1a   :  { %p207_p11 = por %p206_p10, %p205_p9 }
  0x1b   :  { %67 = vadd.xlane.f32.xlu1 %v66_v10 }
  0x1c   :  { %59 = vadd.xlane.f32.xlu0 %v58_v11  ;;  %v86_v42 = vld [vmem:[#allocation2] sm:$0xff]  ;;  %p208_p12 = pnand %p207_p11, %p201_p8 }
  0x1d   :  { %v99_v18 = vld [vmem:[#allocation3] sm:$0xff]  ;;  %v87_v47 = vld [vmem:[#allocation2 + $0x8] sm:$0xff] }
  0x1e   :  { %v100_v20 = vld [vmem:[#allocation3 + $0x8] sm:$0xff]  ;;  %v103_v21 = vadd.f32 %v99_v18, %v42_v17 }
  0x1f   :  { %51 = vadd.xlane.f32.xlu1 %v50_v15  ;;  %v104_v22 = vadd.f32 %v100_v20, %v43_v19 }
  0x20   :  { %48 = vadd.xlane.f32.xlu0 %v47_v14  ;;  %105 = vst.msk [vmem:[#allocation3] sm:$0xff] %vm33_vm1, %v103_v21 }
  0x21   :  { %106 = vst.msk [vmem:[#allocation3 + $0x8] sm:$0xff] %vm33_vm1, %v104_v22 }
  0x27   :  { %v124_v23 = vld [vmem:[#allocation3] sm:$0xff] }
  0x28   :  { %v125_v24 = vld [vmem:[#allocation3 + $0x8] sm:$0xff]  ;;  %v126_v25 = vsel %vm33_vm1, %v124_v23, 0.0 }
  0x29   :  { %v127_v26 = vsel %vm33_vm1, %v125_v24, 0.0 }
  0x2a   :  { %v128_v27 = vadd.f32 %v127_v26, %v126_v25 }
  0x2c   :  { %129 = vadd.xlane.f32.xlu1 %v128_v27 }
  0xa4   :  { %v65_v28 = vpop.xlane.xlu1 %64 }
  0xa5   :  { %v57_v29 = vpop.xlane.xlu0 %56 }
  0xa6   :  { %v69_v30 = vmul.f32 %v65_v28, %v57_v29 }
  0xa8   :  { %v71_v31 = vmax.f32 %v69_v30, 1e-30  ;;  %v68_v32 = vpop.xlane.xlu1 %67 }
  0xa9   :  { %v60_v33 = vpop.xlane.xlu0 %59 }
  0xaa   :  { %172 = vrsqrt.f32 %v71_v31  ;;  %v70_v34 = vmul.f32 %v68_v32, %v60_v33 }
  0xac   :  { %v72_v35 = vmax.f32 %v70_v34, 1e-30  ;;  %v52_v39 = vpop.xlane.xlu1 %51 }
  0xad   :  { %v49_v36 = vpop.xlane.xlu0 %48 }
  0xae   :  { %174 = vrsqrt.f32 %v72_v35 }
  0xb4   :  { %v173_v37 = vpop.eup %172 }
  0xb5   :  { %v75_v38 = vmul.f32 %v173_v37, %v49_v36 }
  0xb7   :  { %v88_v40 = vsub.f32 1.0, %v75_v38 }
  0xb8   :  { %v175_v41 = vpop.eup %174 }
  0xb9   :  { %v90_v43 = vmul.f32 %v88_v40, %v42_v17  ;;  %v76_v44 = vmul.f32 %v175_v41, %v52_v39  ;;  %v130_v55 = vpop.xlane.xlu1 %129 }
  0xba   :  { %v131_v56 = vrot.slane %v130_v55, 4 }
  0xbb   :  { %v94_v45 = vadd.f32 %v90_v43, %v86_v42  ;;  %v89_v46 = vsub.f32 1.0, %v76_v44 }
  0xbc   :  { %v132_v57 = vadd.f32 %v131_v56, %v130_v55 }
  0xbd   :  { %97 = vst.msk [vmem:[#allocation2] sm:$0xff] %vm33_vm1, %v94_v45  ;;  %v91_v48 = vmul.f32 %v89_v46, %v43_v19 }
  0xbe   :  { %v133_v58 = vrot.slane %v132_v57, 2 }
  0xbf   :  { %v95_v49 = vadd.f32 %v91_v48, %v87_v47 }
  0xc0   :  { %v134_v62 = vadd.f32 %v133_v58, %v132_v57 }
  0xc1   :  { %98 = vst.msk [vmem:[#allocation2 + $0x8] sm:$0xff] %vm33_vm1, %v95_v49 }
  0xc2   :  { %v135_v1 = vrot.slane %v134_v62, 1 }
  0xc4   :  { %v110_v50 = vld [vmem:[#allocation2] sm:$0xff]  ;;  %v136_v4 = vadd.f32 %v135_v1, %v134_v62 }
  0xc5   :  { %v112_v52 = vsel %vm33_vm1, %v110_v50, 0.0 }
  0xc8   :  { %v111_v51 = vld [vmem:[#allocation2 + $0x8] sm:$0xff] }
  0xc9   :  { %v113_v53 = vsel %vm33_vm1, %v111_v51, 0.0 }
  0xca   :  { %v114_v54 = vadd.f32 %v113_v53, %v112_v52 }
  0xcc   :  { %115 = vadd.xlane.f32.xlu0 %v114_v54 }
 0x159   :  { %v116_v59 = vpop.xlane.xlu0 %115 }
 0x15a   :  { %v117_v60 = vrot.slane %v116_v59, 4 }
 0x15c   :  { %v118_v61 = vadd.f32 %v117_v60, %v116_v59 }
 0x15e   :  { %v119_v63 = vrot.slane %v118_v61, 2 }
 0x160   :  { %v120_v0 = vadd.f32 %v119_v63, %v118_v61 }
 0x162   :  { %v121_v2 = vrot.slane %v120_v0, 1 }
 0x164   :  { %v122_v3 = vadd.f32 %v121_v2, %v120_v0 }
 0x166   :  { %161 = vpush %v122_v3 }
 0x167   :  { %163 = vpush %v136_v4 }
 0x197   :  { %s162_s2 = spop %161 }
 0x198   :  { %s164_s5 = spop %163 }
 0x199   :  { %s138_s6 = sadd.f32 1e-06, %s164_s5 }
 0x19b   :  { %v139_v5 = vstv %s138_s6 }
 0x19c   :  { %176 = vrcp.f32 %v139_v5 }
 0x1a6   :  { %v177_v6 = vpop.eup %176 }
 0x1a7   :  { %165 = vpush %v177_v6 }
 0x1d8   :  { %s166_s9 = spop %165 }
 0x1d9   :  { %s142_s10 = smul.f32 %s166_s9, %s162_s2 }
 0x1db   :  { %v143_v7 = vstv %s142_s10 }
 0x1dc   :  { %145 = vst.msk [vmem:[#allocation7] sm:$0x1] %vm144_vm2, %v143_v7 }
 0x1dd   :  { %211 = shalt.err (!%p208_p12)
}
 0x1de   :  { %s212_s15 = scalar_lea.hbm %s308_s3, 16 }
 0x1df   :  { %p213_p13 = scmp.ne.s32.totalorder %s308_s3, %s212_s15  ;;  %p216_p0 = scmp.lt.u32.totalorder %s212_s15, %s308_s3 }
 0x1e1   :  { %p218_p1 = pnand %p216_p0, %p213_p13 }
 0x1e3   :  { %221 = shalt.err (!%p218_p1)
}
 0x1e4   :  { %155 = dma.vmem_to_hbm [thread:$0]  %s153_s8, 16, %s308_s3, [#allocation6]  }
 0x1e5   :  { %224 = dma.done.wait [#allocation6], 16  }
 0x1e6   :  { %225 = vsyncadd [#allocation6], 4294967280 }
 0x1e7   :  { %159 = vsyncpa [#allocation5], 1 }
 0x1e8   :  { %160 = vsyncpa [#allocation6], 1 }

</bundles_post_ra>
